<compile_context>
chip_gen: v6e
topology: v6e:2x2x1
jax: 0.10.0
libtpu: 0.0.40
codegen_flags: <defaults>
</compile_context>

<pallas_src>
import jax
import jax.numpy as jnp
from jax.experimental import pallas as pl
from jax.experimental.pallas import tpu as pltpu


def _round_up(x, m):
    return (x + m - 1) // m * m


def _downsample_gemm_kernel(cols_ref, w_ref, b_ref, o_ref, acc_ref):
    """One (batch, pixel-tile, K-tile) step of the conv-as-GEMM.

    cols_ref: (1, TK, TM)  compute_dtype  im2col columns for TM output pixels
    w_ref   : (C, TK)      compute_dtype  conv weights, (c_out, kh*kw*c_in) slab
    b_ref   : (C, 1)       f32            bias
    o_ref   : (1, C, TM)                  output pixels (lane axis = pixels, dense)
    acc_ref : (C, TM)      f32            accumulator scratch (lives across K axis)
    """
    k = pl.program_id(2)

    @pl.when(k == 0)
    def _init():
        acc_ref[...] = jnp.zeros_like(acc_ref)

    acc_ref[...] += jnp.dot(w_ref[...], cols_ref[0],
                            preferred_element_type=jnp.float32)

    @pl.when(k == pl.num_programs(2) - 1)
    def _finalize():
        o_ref[0] = (acc_ref[...] + b_ref[...]).astype(o_ref.dtype)


def _vmem_capacity_bytes():
    try:
        return int(pltpu.get_tpu_info().vmem_capacity_bytes)
    except Exception:
        return 64 << 20          # conservative fallback (v7x per-TensorCore VMEM)


def _pick_tile_m(m, tk, c, in_itemsize, out_itemsize, budget_bytes):
    """Largest multiple-of-128 pixel tile whose per-step VMEM footprint fits the
    budget; among fitting candidates prefer the one that minimizes padding waste
    of M (ties -> bigger tile).  Never falls back to an un-budgeted whole-M tile."""
    m128 = _round_up(m, 128)
    cap = min(2048, m128)        # >2048 buys nothing more at the HBM roofline
    fits = []
    for tm in range(128, cap + 1, 128):
        need = (2 * tk * tm * in_itemsize        # cols block, double buffered
                + 2 * c * tm * out_itemsize      # out block, double buffered
                + c * tm * 4)                    # f32 accumulator scratch
        if need <= budget_bytes:
            fits.append(tm)
    if not fits:
        return 128
    return min(fits, key=lambda tm: (_round_up(m, tm), -tm))


def downsample(x_nchw, w, b, *, compute_dtype=jnp.bfloat16, out_dtype=None):
    """Conv2d(dim, dim, kernel=3, stride=2, padding=1) forward pass.

    x_nchw: (B, C, H, W); w: (3, 3, C_in, C_out) (== torch weight.permute(2,3,1,0));
    b: (C,).  Operands are computed in `compute_dtype` (bf16 by default, MXU
    native) with f32 accumulation; pass compute_dtype=jnp.float32 to match a pure
    f32 PyTorch Conv2d to f32 tolerances.  Returns (B, C, H_out, W_out) in
    `out_dtype` (default: x.dtype).
    """
    B, C, H, W = x_nchw.shape
    out_dtype = x_nchw.dtype if out_dtype is None else out_dtype
    H_out = (H + 2 - 3) // 2 + 1
    W_out = (W + 2 - 3) // 2 + 1
    M = H_out * W_out
    K = 9 * C

    in_itemsize = jnp.dtype(compute_dtype).itemsize
    out_itemsize = jnp.dtype(out_dtype).itemsize

    # K tiling: whole-K GEMM while it is small, 512-deep K tiles (multiple of the
    # 256 / 128 MXU contraction granule) beyond that so weight/cols blocks stay
    # bounded in VMEM at any channel count.
    if K <= 1024:
        TK, K_pad = K, K
    else:
        TK = 512
        K_pad = _round_up(K, TK)
    n_k = K_pad // TK

    # Generation-aware pixel-tile budget.
    cap = _vmem_capacity_bytes()
    resident = 2 * C * TK * in_itemsize + 2 * C * 4     # weight + bias buffers
    budget = max(4 << 20, int(0.55 * cap) - resident)
    TM = _pick_tile_m(M, TK, C, in_itemsize, out_itemsize, budget)
    M_pad = _round_up(M, TM)
    n_t = M_pad // TM

    # im2col straight from NCHW, cast to compute_dtype FIRST so the pad / 9
    # strided slices / concat and the slab's HBM round trip move half the bytes.
    # TODO(synk): build the 9 taps inside the kernel from x held in pl.ANY via
    # strided DMA to eliminate the im2col HBM round trip entirely.
    x_c = x_nchw.astype(compute_dtype)
    xpad = jnp.pad(x_c, ((0, 0), (0, 0), (1, 1), (1, 1)))
    taps = [xpad[:, :, kh:kh + 2 * H_out:2, kw:kw + 2 * W_out:2]
            for kh in range(3) for kw in range(3)]
    cols = jnp.concatenate(taps, axis=1).reshape(B, K, M)   # K order = (kh, kw, c_in)
    cols = jnp.pad(cols, ((0, 0), (0, K_pad - K), (0, M_pad - M)))

    # Weights reshaped once to match the K ordering; bias as an f32 column.
    w_mat = jnp.transpose(w, (3, 0, 1, 2)).reshape(C, K).astype(compute_dtype)
    w_mat = jnp.pad(w_mat, ((0, 0), (0, K_pad - K)))
    b_col = b.reshape(C, 1).astype(jnp.float32)

    # Explicit scoped-VMEM limit: enough for all blocks + headroom, well below
    # physical capacity on every generation.
    need = (2 * TK * TM * in_itemsize + 2 * C * TM * out_itemsize
            + C * TM * 4 + resident)
    vmem_limit = int(min(0.8 * cap, max(32 << 20, need + (16 << 20))))

    cost = pl.CostEstimate(
        flops=2 * B * M_pad * C * K_pad,
        transcendentals=0,
        bytes_accessed=(B * K_pad * M_pad * in_itemsize       # cols read
                        + C * K_pad * in_itemsize + C * 4     # weights + bias
                        + B * C * M_pad * out_itemsize),      # output write
    )

    out_flat = pl.pallas_call(
        _downsample_gemm_kernel,
        out_shape=jax.ShapeDtypeStruct((B, C, M_pad), out_dtype),
        grid=(B, n_t, n_k),
        in_specs=[
            pl.BlockSpec((1, TK, TM), lambda bi, ti, ki: (bi, ki, ti)),
            pl.BlockSpec((C, TK), lambda bi, ti, ki: (0, ki)),
            pl.BlockSpec((C, 1), lambda bi, ti, ki: (0, 0)),
        ],
        out_specs=pl.BlockSpec((1, C, TM), lambda bi, ti, ki: (bi, 0, ti)),
        scratch_shapes=[pltpu.VMEM((C, TM), jnp.float32)],
        compiler_params=pltpu.CompilerParams(
            dimension_semantics=("parallel", "parallel", "arbitrary"),
            vmem_limit_bytes=vmem_limit,
        ),
        cost_estimate=cost,
    )(cols, w_mat, b_col)

    # Output is already NCHW-flat: trim the pixel padding, split M back to (H, W).
    return out_flat[:, :, :M].reshape(B, C, H_out, W_out)


if __name__ == "__main__":
    B, C, H, W = 2, 4, 16, 16   # dim = 4

    key = jax.random.PRNGKey(0)
    kx, kw, kb = jax.random.split(key, 3)

    x = jax.random.normal(kx, (B, C, H, W), jnp.float32)

    # Deterministic init mimicking PyTorch Conv2d default (uniform +-1/sqrt(fan_in)).
    fan_in = C * 3 * 3
    bound = 1.0 / (fan_in ** 0.5)
    w = jax.random.uniform(kw, (3, 3, C, C), jnp.float32, -bound, bound)  # (kh, kw, cin, cout)
    b = jax.random.uniform(kb, (C,), jnp.float32, -bound, bound)

    out = jax.block_until_ready(downsample(x, w, b))

    # Reference: XLA conv on the same bf16-cast operands with f32 accumulation
    # (mirrors the kernel's bf16-operand / f32-accumulate MXU path).
    ref = jax.lax.conv_general_dilated(
        x.astype(jnp.bfloat16), w.astype(jnp.bfloat16),
        window_strides=(2, 2), padding=((1, 1), (1, 1)),
        dimension_numbers=("NCHW", "HWIO", "NCHW"),
        preferred_element_type=jnp.float32,
    ) + b.reshape(1, C, 1, 1)
    ref = ref.astype(out.dtype)

    assert out.shape == (B, C, (H + 1) // 2, (W + 1) // 2), out.shape
    max_err = float(jnp.max(jnp.abs(out - ref)))
    assert jnp.allclose(out, ref, atol=2e-3, rtol=2e-3), max_err
    print("KERNEL_OK")
</pallas_src>

<mosaic_0001>
module attributes {stable_mosaic.version = 11 : i64} {
  func.func @_downsample_gemm_kernel(%arg0: i32, %arg1: i32, %arg2: i32, %arg3: memref<1x36x128xbf16, #tpu.memory_space<vmem>>, %arg4: memref<4x36xbf16, #tpu.memory_space<vmem>>, %arg5: memref<4x1xf32, #tpu.memory_space<vmem>>, %arg6: memref<1x4x128xf32, #tpu.memory_space<vmem>>, %arg7: memref<4x128xf32, #tpu.memory_space<vmem>>) attributes {dimension_semantics = [#tpu.dimension_semantics<parallel>, #tpu.dimension_semantics<parallel>, #tpu.dimension_semantics<arbitrary>], iteration_bounds = array<i64: 2, 1, 1>, scalar_prefetch = 0 : i64, scratch_operands = 1 : i64, tpu.core_type = #tpu.core_type<tc>, window_params = [{transform_indices = @transform_0, window_bounds = array<i64: 1, 36, 128>}, {transform_indices = @transform_1, window_bounds = array<i64: 4, 36>}, {pipeline_mode = #tpu.pipeline_mode<synchronous>, transform_indices = @transform_2, window_bounds = array<i64: 4, 1>}, {transform_indices = @transform_3, window_bounds = array<i64: 1, 4, 128>}]} {
    %c0_i32 = arith.constant 0 : i32
    %0 = arith.cmpi eq, %arg2, %c0_i32 : i32
    %1 = arith.extui %0 : i1 to i32
    %c0_i32_0 = arith.constant 0 : i32
    %2 = arith.cmpi ne, %1, %c0_i32_0 : i32
    scf.if %2 {
      %cst_11 = arith.constant 0.000000e+00 : f32
      %13 = vector.broadcast %cst_11 : f32 to vector<4x128xf32>
      %c0_12 = arith.constant 0 : index
      %c0_13 = arith.constant 0 : index
      %14 = vector.load %arg7[%c0_12, %c0_13] : memref<4x128xf32, #tpu.memory_space<vmem>>, vector<4x128xf32>
      tpu.vector_store %arg7[%c0_12, %c0_13], %13 {strides = array<i32>} : memref<4x128xf32, #tpu.memory_space<vmem>>, vector<4x128xf32>,
    } else {
    }
    %c0 = arith.constant 0 : index
    %c0_1 = arith.constant 0 : index
    %3 = vector.load %arg7[%c0, %c0_1] : memref<4x128xf32, #tpu.memory_space<vmem>>, vector<4x128xf32>
    %c0_2 = arith.constant 0 : index
    %c0_3 = arith.constant 0 : index
    %4 = vector.load %arg4[%c0_2, %c0_3] : memref<4x36xbf16, #tpu.memory_space<vmem>>, vector<4x36xbf16>
    %c0_4 = arith.constant 0 : index
    %c0_5 = arith.constant 0 : index
    %c0_6 = arith.constant 0 : index
    %5 = vector.load %arg3[%c0_4, %c0_5, %c0_6] : memref<1x36x128xbf16, #tpu.memory_space<vmem>>, vector<1x36x128xbf16>
    %6 = vector.shape_cast %5 : vector<1x36x128xbf16> to vector<36x128xbf16>
    %cst = arith.constant dense<0.000000e+00> : vector<4x128xf32>
    %7 = tpu.matmul %4, %6, %cst {dimension_numbers = #tpu.dot_dimension_numbers<[1], [0], [0], [1], [0, 0, 1, 1], [], []>} : vector<4x36xbf16>, vector<36x128xbf16>, vector<4x128xf32> -> vector<4x128xf32>
    %8 = arith.addf %3, %7 : vector<4x128xf32>
    %c0_7 = arith.constant 0 : index
    %c0_8 = arith.constant 0 : index
    %9 = vector.load %arg7[%c0_7, %c0_8] : memref<4x128xf32, #tpu.memory_space<vmem>>, vector<4x128xf32>
    tpu.vector_store %arg7[%c0_7, %c0_8], %8 {strides = array<i32>} : memref<4x128xf32, #tpu.memory_space<vmem>>, vector<4x128xf32>,
    %c0_i32_9 = arith.constant 0 : i32
    %10 = arith.cmpi eq, %arg2, %c0_i32_9 : i32
    %11 = arith.extui %10 : i1 to i32
    %c0_i32_10 = arith.constant 0 : i32
    %12 = arith.cmpi ne, %11, %c0_i32_10 : i32
    scf.if %12 {
      %c0_11 = arith.constant 0 : index
      %c0_12 = arith.constant 0 : index
      %13 = vector.load %arg7[%c0_11, %c0_12] : memref<4x128xf32, #tpu.memory_space<vmem>>, vector<4x128xf32>
      %c0_13 = arith.constant 0 : index
      %c0_14 = arith.constant 0 : index
      %14 = vector.load %arg5[%c0_13, %c0_14] : memref<4x1xf32, #tpu.memory_space<vmem>>, vector<4x1xf32>
      %15 = vector.broadcast %14 : vector<4x1xf32> to vector<4x128xf32>
      %16 = arith.addf %13, %15 : vector<4x128xf32>
      %c0_15 = arith.constant 0 : index
      %c0_16 = arith.constant 0 : index
      %c0_17 = arith.constant 0 : index
      %17 = vector.load %arg6[%c0_15, %c0_16, %c0_17] : memref<1x4x128xf32, #tpu.memory_space<vmem>>, vector<1x4x128xf32>
      %18 = vector.shape_cast %17 : vector<1x4x128xf32> to vector<4x128xf32>
      %19 = vector.shape_cast %16 : vector<4x128xf32> to vector<1x4x128xf32>
      tpu.vector_store %arg6[%c0_15, %c0_16, %c0_17], %19 {strides = array<i32>} : memref<1x4x128xf32, #tpu.memory_space<vmem>>, vector<1x4x128xf32>,
    } else {
    }
    return
  }
  func.func @transform_0(%arg0: i32, %arg1: i32, %arg2: i32) -> (i32, i32, i32) {
    %c0_i32 = arith.constant 0 : i32
    return %arg0, %arg2, %arg1 : i32, i32, i32
  }
  func.func @transform_1(%arg0: i32, %arg1: i32, %arg2: i32) -> (i32, i32) {
    %c0_i32 = arith.constant 0 : i32
    %c0_i32_0 = arith.constant 0 : i32
    return %c0_i32, %arg2 : i32, i32
  }
  func.func @transform_2(%arg0: i32, %arg1: i32, %arg2: i32) -> (i32, i32) {
    %c0_i32 = arith.constant 0 : i32
    %c0_i32_0 = arith.constant 0 : i32
    %c0_i32_1 = arith.constant 0 : i32
    return %c0_i32, %c0_i32_0 : i32, i32
  }
  func.func @transform_3(%arg0: i32, %arg1: i32, %arg2: i32) -> (i32, i32, i32) {
    %c0_i32 = arith.constant 0 : i32
    %c0_i32_0 = arith.constant 0 : i32
    return %arg0, %c0_i32, %arg1 : i32, i32, i32
  }
}

</mosaic_0001>

<bundles_post_ra>
// kernel: tpu_custom_call.1
= control target key start
LH: loop header
LB: loop body
LE: loop exit
PB: predicated region body
PF: predicated region fallthrough
CT: control target
= control target key end

     0   :  { %8 = vsyncpa [#allocation4], 0  ;;  %s734_s0 = inlined_call_operand.vmem [shape: bf16[2,36,128], index: 0, kind: input, shape index: {}]   ;;  %s735_s1 = inlined_call_operand.vmem [shape: bf16[4,36], index: 1, kind: input, shape index: {}]   ;;  %s736_s2 = inlined_call_operand.vmem [shape: f32[4,1], index: 2, kind: input, shape index: {}]   ;;  %s737_s3 = inlined_call_operand.hbm [shape: f32[2,4,128], index: 3, kind: output, shape index: {}]  }
   0x1   :  { %10 = vsyncpa [#allocation4 + $0x1], 0  ;;  %s629_s12 = smov 0   ;;  %s631_s13 = smov 0  }
   0x2   :  { %s633_s14 = smov 0   ;;  %s635_s15 = smov 0  }
   0x3   :  { %s637_s16 = smov 0   ;;  %s639_s17 = smov 0  }
   0x4 LB: > { %s434_s18 = sadd.s32 4294967295, %s603_s17   ;;  %s435_s19 = sadd.s32 4294967294, %s603_s17   ;;  %s603_s17 = sphi %s639_s17, %s16_s17   ;;  %s599_s16 = sphi %s637_s16, %s744_s16   ;;  %s595_s15 = sphi %s635_s15, %s743_s15   ;;  %s591_s14 = sphi %s633_s14, %s742_s14   ;;  %s587_s13 = sphi %s631_s13, %s741_s13   ;;  %s583_s12 = sphi %s629_s12, %s740_s12  }
   0x5   : > { %s35_s20 = sadd.s32 1, %s599_s16  ;;  %s121_s21 = sadd.s32 1, %s591_s14 }
   0x6   : > { %p37_p0 = scmp.ge.s32.totalorder %s35_s20, 2  ;;  %p131_p1 = scmp.ne.s32.totalorder %s591_s14, %s587_s13 }
   0x7   : > { %p132_p2 = scmp.eq.s32.totalorder %s434_s18, 1  ;;  %p137_p3 = scmp.ne.s32.totalorder %s587_s13, %s583_s12 }
   0x8   : > { %s746_s20 = smov (%p37_p0, %s35_s20), 0  ;;  %p138_p5 = scmp.eq.s32.totalorder %s435_s19, 1 }
   0x9   : > { %p669_p4 = por %p132_p2, %p131_p1  ;;  %s116_s23 = ssub.s32 %s599_s16, %s746_s20 }
   0xa   : > { %p439_p6 = scmp.ge.s32.totalorder %s603_s17, 1  ;;  %p119_p7 = scmp.eq.s32.totalorder %s116_s23, 0 }
   0xb   : > { %p676_p8 = por %p138_p5, %p137_p3  ;;  %p182_p9 = scmp.lt.s32.totalorder %s603_s17, 3 }
   0xc   : > { %s682_s25 = scalar_select %p119_p7, %s591_s14, %s121_s21  }
   0xd   : > { %p183_p10 = pnand %p439_p6, %p182_p9 }
   0xe   : > { %p218_p11 = scmp.lt.s32.totalorder (!%p183_p10), %s595_s15, 1  ;;  %s214_s8 = sand.u32 (!%p183_p10), 1, %s587_s13  }
   0xf   : > { %186 = sbr.rel (%p183_p10) target bundleno = 256 (0x100), region = 32  ;;  %s440_s9 = sshll.u32 (!%p183_p10), %s214_s8, 2 }
  0x10   : > { %s447_s10 = sshll.u32 (!%p183_p10), %s595_s15, 6  ;;  %s216_s11 = scalar_lea.vmem (!%p183_p10), [#allocation3], %s440_s9 }
  0x11   : > { %s339_s18 = sshll.u32 (!%p183_p10), %s216_s11, 4  ;;  %s337_s23 = scalar_lea.hbm (!%p183_p10), %s737_s3, %s447_s10  ;;  %s340_s18 = int_to_ptr.vmem [resolvable:$true] %s339_s18 }
  0x12   : > { %s325_s26 = scalar_lea.sflag (!%p183_p10), [#allocation4], %s214_s8  ;;  %s527_s27 = scalar_lea.vmem (!%p183_p10), %s340_s18, 64 }
  0x13   : > { %p528_p12 = scmp.ne.s32.totalorder (!%p183_p10), %s340_s18, %s527_s27 }
  0x14   : > { %v605_v0 = vmov 0.0   ;;  %vm606_vm0 = vmmov 0   ;;  %v316_v1 = vld [vmem:[%s736_s2] sm:$0xf]  ;;  %s219_s28 = scalar_select %p218_p11, %s595_s15, 1  ;;  %v607_v2 = vmov 0  }
  0x15   : > { %454 = vmatprep.subr.bf16.mxu0 %v605_v0  ;;  %239 = vst [vmem:[#allocation2] sm:$0xf] %v605_v0  ;;  %460 = vmatprep.mubr.msk.bf16.mxu0 %vm606_vm0, %v605_v0  ;;  %vm266_vm1 = vcmask 1041408   ;;  %v241_v7 = vld [vmem:[%s735_s1] sm:$0x3]  ;;  %vm262_vm2 = vcmask 293888   ;;  %p529_p13 = pnand %p528_p12, %p669_p4 }
  0x16   : > { %523 = vset.pattern.permute.xlu0 %v607_v2  ;;  %s464_s29 = smul.u32 20, %s219_s28  ;;  %s608_s28 = smov [#allocation3]  }
  0x17   : > { %319 = vperm.xlu0 %523, %v316_v1   ;;  %p530_p0 = pneg %p529_p13 }
  0x18   : > { %s228_s5 = scalar_lea.vmem %s734_s0, %s464_s29  ;;  %s531_s29 = sshll.u32 %s608_s28, 4  ;;  %s532_s29 = int_to_ptr.vmem [resolvable:$false] %s531_s29 }
  0x19   : > { %v524_v3 = vld [vmem:[%s228_s5 + $0x10] ss:$0 sps:$4 sm:$0x33]   ;;  %v525_v5 = vld [vmem:[%s228_s5 + $0x8] sm:$0xff]   ;;  %v526_v6 = vld [vmem:[%s228_s5] sm:$0xff]   ;;  %s533_s15 = scalar_lea.vmem %s532_s29, 128  ;;  %p534_p1 = scmp.lt.s32.totalorder %s340_s18, %s532_s29 }
  0x1a   : > { %v268_v4 = vsel %vm266_vm1, %v524_v3, 0  ;;  %p535_p2 = scmp.lt.s32.totalorder %s533_s15, %s527_s27 }
  0x1b   : > { %455 = vmatpush3.bf16.msra.mxu0 %v268_v4 }
  0x1c   : > { %456 = vmatprep.subr.bf16.mxu0 %v605_v0  ;;  %v240_v8 = vld [vmem:[#allocation2] sm:$0xf]  ;;  %p536_p3 = por %p535_p2, %p534_p1 }
  0x1e   : > { %p537_p5 = pnand %p536_p3, %p530_p0 }
  0x1f   : > { %457 = vmatpush3.bf16.msra.mxu0 %v525_v5 }
  0x20   : > { %458 = vmatprep.subr.bf16.mxu0 %v605_v0 }
  0x23   : > { %459 = vmatpush3.bf16.msra.mxu0 %v526_v6 }
  0x26   : > { %461 = vmatmul.mubr.msk.bf16.vlgmr.msra.gmra.mxu0 %vm262_vm2, %v241_v7 }
  0x92   : > { %v320_v14 = vpop.permute.xlu0 %319 }
  0xe6   : > { %v304_v9 = vpop.f32.mrf.mxu0 }
  0xe7   : > { %v310_v10 = vadd.f32 %v304_v9, %v240_v8 }
  0xe8   : > { %v462_v11 = vpop.f32.mrf.mxu0 }
  0xe9   : > { %311 = vst [vmem:[#allocation2] sm:$0xf] %v310_v10 }
  0xea   : > { %v307_v12 = vpop.f32.mrf.mxu0 }
  0xec   : > { %v463_v13 = vpop.f32.mrf.mxu0 }
  0xf0   : > { %v315_v15 = vld [vmem:[#allocation2] sm:$0xf] }
  0xf1   : > { %v322_v16 = vadd.f32 %v320_v14, %v315_v15 }
  0xf3   : > { %323 = vst [vmem:[%s216_s11] sm:$0xf] %v322_v16 }
  0xf4   : > { %540 = shalt.err (!%p537_p5)
}
  0xf5   : > { %s541_s30 = scalar_lea.hbm %s337_s23, 64  ;;  %s545_s6 = scalar_lea.hbm %s737_s3, 128 }
  0xf6   : > { %p542_p6 = scmp.ne.s32.totalorder %s337_s23, %s541_s30  ;;  %p546_p10 = scmp.lt.s32.totalorder %s337_s23, %s737_s3 }
  0xf7   : > { %p547_p11 = scmp.lt.s32.totalorder %s545_s6, %s541_s30 }
  0xf8   : > { %p543_p7 = pnand %p542_p6, %p669_p4 }
  0xf9   : > { %p548_p12 = por %p547_p11, %p546_p10 }
  0xfa   : > { %p544_p9 = pneg %p543_p7 }
  0xfc   : > { %p549_p13 = pnand %p548_p12, %p544_p9 }
  0xfe   : > { %552 = shalt.err (!%p549_p13)
}
  0xff   : > { %465 = dma.vmem_to_hbm [thread:$0]  (%p669_p4), %s340_s18, 64, %s337_s23, %s325_s26  }
 0x100 PF: > { %p471_p0 = scmp.ge.s32.totalorder %s603_s17, 2  ;;  %s351_s9 = sand.u32 1, %s583_s12  }
 0x101   : > { %s352_s10 = scalar_lea.sflag [#allocation4], %s351_s9 }
 0x102   : > { %p468_p1 = pnand %p471_p0, %p676_p8 }
 0x104   : > { %p469_p2 = pneg %p468_p1 }
 0x106   : > { %578 = dma.done.wait (%p469_p2), %s352_s10, 64  }
 0x107   : > { %580 = vsyncadd (%p469_p2), %s352_s10, 4294967232  ;;  %s16_s17 = sadd.s32 1, %s603_s17   ;;  %s740_s12 = smov %s587_s13 }
 0x108   : > { %p13_p3 = scmp.ge.s32.totalorder %s16_s17, 4   ;;  %s741_s13 = smov %s591_s14 }
 0x109   : > { %s742_s14 = smov %s682_s25  ;;  %s743_s15 = smov %s599_s16 }
 0x10a   : > { %s744_s16 = smov %s746_s20  ;;  %15 = sbr.rel (!%p13_p3) target bundleno = 4 (0x4), region = 78 }
 0x10f   :  { %357 = vsyncpa [#allocation4], 1 }
 0x110   :  { %359 = vsyncpa [#allocation4 + $0x1], 1 }

</bundles_post_ra>
